<compile_context>
chip_gen: v6e
topology: v6e:2x2x1
jax: 0.10.0
libtpu: 0.0.40
codegen_flags: <defaults>
</compile_context>

<pallas_src>
import functools

import jax
import jax.numpy as jnp
import numpy as np
from jax.experimental import pallas as pl
from jax.experimental.pallas import tpu as pltpu

_LANE = 128
_SUBLANE = 8


def _round_up(x, m):
    return (x + m - 1) // m * m


def _pad2d(a, rows, cols):
    return jnp.pad(a, ((0, rows - a.shape[0]), (0, cols - a.shape[1])))


def _ffn_head_kernel(n_blocks, in_pad, h_pad, out_pad, x_ref, w_ref, b_ref, o_ref):
    """Whole FFN head on one (TILE_B, *) batch tile; weights stay VMEM-resident.

    w_ref (bf16), row-packed:
        rows [0, in_pad)                            : input-block weight (in_pad, h_pad)
        rows [in_pad + j*h_pad, ...), j<n_blocks-1  : hidden weights     (h_pad, h_pad)
        last h_pad rows                             : output weight      (h_pad, out_pad)
    b_ref (f32): (n_blocks + 1, max(h_pad, out_pad)) — one bias row per layer.
    All padding is zeros, so padded lanes remain exactly zero through ReLU.
    """
    # Input block: single matmul (dim-1 concat already folded in the wrapper).
    h = jnp.dot(x_ref[...], w_ref[0:in_pad, 0:h_pad],
                preferred_element_type=jnp.float32)
    h = jnp.maximum(h + b_ref[0:1, 0:h_pad], 0.0)          # f32 VPU work

    # Hidden blocks.
    off = in_pad
    for j in range(1, n_blocks):
        w = w_ref[off:off + h_pad, 0:h_pad]
        off += h_pad
        h = jnp.dot(h.astype(w_ref.dtype), w, preferred_element_type=jnp.float32)
        h = jnp.maximum(h + b_ref[j:j + 1, 0:h_pad], 0.0)

    # Output linear (no activation); lane-dense (out_pad = multiple of 128) store.
    w_out = w_ref[off:off + h_pad, 0:out_pad]
    y = jnp.dot(h.astype(w_ref.dtype), w_out, preferred_element_type=jnp.float32)
    y = y + b_ref[n_blocks:n_blocks + 1, 0:out_pad]
    o_ref[...] = y.astype(o_ref.dtype)


def ffn_base_head_forward(rxn_fp, agent_input, params, *, n_blocks):
    """params = {'w1': (in_dim, H), 'b1': (1, H),
                 'wh': [(H, H)] * (n_blocks-1), 'bh': [(1, H)] * (n_blocks-1),
                 'wo': (H, out_dim), 'bo': (1, out_dim)}"""
    B = rxn_fp.shape[0]
    in_dim = params["w1"].shape[0]
    H = params["w1"].shape[1]
    out_dim = params["wo"].shape[1]

    in_pad = _round_up(in_dim, _LANE)
    h_pad = _round_up(H, _LANE)
    out_pad = _round_up(out_dim, _LANE)
    wpad = max(h_pad, out_pad)

    # Fold the concat in the wrapper (cheap XLA op), pad K to lane width,
    # pad batch to the batch tile, cast activations to bf16 for the MXU.
    tile_b = min(256, _round_up(B, _SUBLANE))
    b_pad = _round_up(B, tile_b)
    x = jnp.concatenate([rxn_fp, agent_input], axis=1)
    x = jnp.pad(x, ((0, b_pad - B), (0, in_pad - x.shape[1]))).astype(jnp.bfloat16)

    # Pack all weights into ONE bf16 slab (single DMA), zero-padded.
    w_blocks = [_pad2d(params["w1"], in_pad, wpad)]
    for wh in params["wh"]:
        w_blocks.append(_pad2d(wh, h_pad, wpad))
    w_blocks.append(_pad2d(params["wo"], h_pad, wpad))
    w_packed = jnp.concatenate(w_blocks, axis=0).astype(jnp.bfloat16)
    w_rows = in_pad + n_blocks * h_pad

    # Pack all biases into ONE f32 slab (biases stay f32 for the VPU).
    b_blocks = [_pad2d(params["b1"].reshape(1, -1), 1, wpad)]
    for bh in params["bh"]:
        b_blocks.append(_pad2d(bh.reshape(1, -1), 1, wpad))
    b_blocks.append(_pad2d(params["bo"].reshape(1, -1), 1, wpad))
    b_packed = jnp.concatenate(b_blocks, axis=0).astype(jnp.float32)

    kernel = functools.partial(_ffn_head_kernel, n_blocks, in_pad, h_pad, out_pad)

    out = pl.pallas_call(
        kernel,
        out_shape=jax.ShapeDtypeStruct((b_pad, out_pad), jnp.float32),
        grid=(b_pad // tile_b,),
        in_specs=[
            pl.BlockSpec((tile_b, in_pad), lambda i: (i, 0)),       # activations
            pl.BlockSpec((w_rows, wpad), lambda i: (0, 0)),         # weights (resident)
            pl.BlockSpec((n_blocks + 1, wpad), lambda i: (0, 0)),   # biases  (resident)
        ],
        out_specs=pl.BlockSpec((tile_b, out_pad), lambda i: (i, 0)),
        compiler_params=pltpu.CompilerParams(
            dimension_semantics=("parallel",),
        ),
    )(x, w_packed, b_packed)

    return out[:B, :out_dim].astype(rxn_fp.dtype)


def _reference_forward(rxn_fp, agent_input, params, *, n_blocks):
    """Pure-JAX f32 reference (mirrors the PyTorch module)."""
    x = jnp.concatenate([rxn_fp, agent_input], axis=1)
    x = jnp.maximum(x @ params["w1"] + params["b1"], 0.0)
    for wh, bh in zip(params["wh"], params["bh"]):
        x = jnp.maximum(x @ wh + bh, 0.0)
    return x @ params["wo"] + params["bo"]


def _init_params(key, in_dim, hidden_dim, out_dim, n_blocks):
    """Deterministic synthetic weights (uniform, torch-Linear-like scale)."""
    keys = jax.random.split(key, 2 * (n_blocks + 1))

    def lin(kw, kb, fan_in, fan_out):
        bound = 1.0 / np.sqrt(fan_in)
        w = jax.random.uniform(kw, (fan_in, fan_out), jnp.float32, -bound, bound)
        b = jax.random.uniform(kb, (1, fan_out), jnp.float32, -bound, bound)
        return w, b

    w1, b1 = lin(keys[0], keys[1], in_dim, hidden_dim)
    wh_list, bh_list = [], []
    for i in range(n_blocks - 1):
        wh, bh = lin(keys[2 + 2 * i], keys[3 + 2 * i], hidden_dim, hidden_dim)
        wh_list.append(wh)
        bh_list.append(bh)
    wo, bo = lin(keys[2 * n_blocks], keys[2 * n_blocks + 1], hidden_dim, out_dim)
    return {"w1": w1, "b1": b1, "wh": wh_list, "bh": bh_list, "wo": wo, "bo": bo}


if __name__ == "__main__":
    # Small, module-consistent shapes.
    batch = 8
    fp_dim = 16                  # rxn_fp has width fp_dim * 2
    agent_input_dim = 16
    hidden_dim = 32
    output_dim = 8
    n_blocks = 3
    # TODO(synk): FFNBase source not shown; assumed standard quarc structure of
    # 1 input block + (n_blocks-1) hidden blocks + output Linear, dropout=identity.

    in_dim = fp_dim * 2 + agent_input_dim  # additional_input_dim = 0

    key = jax.random.PRNGKey(0)
    k_rxn, k_agent, k_params = jax.random.split(key, 3)
    rxn_fp = jax.random.normal(k_rxn, (batch, fp_dim * 2), jnp.float32)
    agent_input = jax.random.normal(k_agent, (batch, agent_input_dim), jnp.float32)
    params = _init_params(k_params, in_dim, hidden_dim, output_dim, n_blocks)

    out = ffn_base_head_forward(rxn_fp, agent_input, params, n_blocks=n_blocks)
    out = jax.block_until_ready(out)

    ref = _reference_forward(rxn_fp, agent_input, params, n_blocks=n_blocks)
    # bf16 matmul operands -> loosened tolerance vs. the f32 reference.
    np.testing.assert_allclose(np.asarray(out), np.asarray(ref), rtol=2e-2, atol=2e-2)

    print("KERNEL_OK")
</pallas_src>

<mosaic_0001>
module attributes {stable_mosaic.version = 11 : i64} {
  func.func @_ffn_head_kernel(%arg0: i32, %arg1: memref<8x128xbf16, #tpu.memory_space<vmem>>, %arg2: memref<512x128xbf16, #tpu.memory_space<vmem>>, %arg3: memref<4x128xf32, #tpu.memory_space<vmem>>, %arg4: memref<8x128xf32, #tpu.memory_space<vmem>>) attributes {dimension_semantics = [#tpu.dimension_semantics<parallel>], iteration_bounds = array<i64: 1>, scalar_prefetch = 0 : i64, scratch_operands = 0 : i64, tpu.core_type = #tpu.core_type<tc>, window_params = [{transform_indices = @transform_0, window_bounds = array<i64: 8, 128>}, {pipeline_mode = #tpu.pipeline_mode<synchronous>, transform_indices = @transform_1, window_bounds = array<i64: 512, 128>}, {pipeline_mode = #tpu.pipeline_mode<synchronous>, transform_indices = @transform_2, window_bounds = array<i64: 4, 128>}, {transform_indices = @transform_3, window_bounds = array<i64: 8, 128>}]} {
    %c0 = arith.constant 0 : index
    %c0_0 = arith.constant 0 : index
    %0 = vector.load %arg1[%c0, %c0_0] : memref<8x128xbf16, #tpu.memory_space<vmem>>, vector<8x128xbf16>
    %c0_1 = arith.constant 0 : index
    %c0_2 = arith.constant 0 : index
    %1 = vector.load %arg2[%c0_1, %c0_2] : memref<512x128xbf16, #tpu.memory_space<vmem>>, vector<128x128xbf16>
    %cst = arith.constant dense<0.000000e+00> : vector<8x128xf32>
    %2 = tpu.matmul %0, %1, %cst {dimension_numbers = #tpu.dot_dimension_numbers<[1], [0], [0], [1], [0, 0, 1, 1], [], []>} : vector<8x128xbf16>, vector<128x128xbf16>, vector<8x128xf32> -> vector<8x128xf32>
    %c0_3 = arith.constant 0 : index
    %c0_4 = arith.constant 0 : index
    %3 = vector.load %arg3[%c0_3, %c0_4] : memref<4x128xf32, #tpu.memory_space<vmem>>, vector<1x128xf32>
    %4 = vector.broadcast %3 : vector<1x128xf32> to vector<8x128xf32>
    %5 = arith.addf %2, %4 : vector<8x128xf32>
    %cst_5 = arith.constant 0.000000e+00 : f32
    %6 = vector.broadcast %cst_5 : f32 to vector<8x128xf32>
    %7 = arith.maximumf %5, %6 : vector<8x128xf32>
    %c128 = arith.constant 128 : index
    %c0_6 = arith.constant 0 : index
    %8 = vector.load %arg2[%c128, %c0_6] : memref<512x128xbf16, #tpu.memory_space<vmem>>, vector<128x128xbf16>
    %9 = arith.truncf %7 : vector<8x128xf32> to vector<8x128xbf16>
    %cst_7 = arith.constant dense<0.000000e+00> : vector<8x128xf32>
    %10 = tpu.matmul %9, %8, %cst_7 {dimension_numbers = #tpu.dot_dimension_numbers<[1], [0], [0], [1], [0, 0, 1, 1], [], []>} : vector<8x128xbf16>, vector<128x128xbf16>, vector<8x128xf32> -> vector<8x128xf32>
    %c1 = arith.constant 1 : index
    %c0_8 = arith.constant 0 : index
    %11 = vector.load %arg3[%c1, %c0_8] : memref<4x128xf32, #tpu.memory_space<vmem>>, vector<1x128xf32>
    %12 = vector.broadcast %11 : vector<1x128xf32> to vector<8x128xf32>
    %13 = arith.addf %10, %12 : vector<8x128xf32>
    %cst_9 = arith.constant 0.000000e+00 : f32
    %14 = vector.broadcast %cst_9 : f32 to vector<8x128xf32>
    %15 = arith.maximumf %13, %14 : vector<8x128xf32>
    %c256 = arith.constant 256 : index
    %c0_10 = arith.constant 0 : index
    %16 = vector.load %arg2[%c256, %c0_10] : memref<512x128xbf16, #tpu.memory_space<vmem>>, vector<128x128xbf16>
    %17 = arith.truncf %15 : vector<8x128xf32> to vector<8x128xbf16>
    %cst_11 = arith.constant dense<0.000000e+00> : vector<8x128xf32>
    %18 = tpu.matmul %17, %16, %cst_11 {dimension_numbers = #tpu.dot_dimension_numbers<[1], [0], [0], [1], [0, 0, 1, 1], [], []>} : vector<8x128xbf16>, vector<128x128xbf16>, vector<8x128xf32> -> vector<8x128xf32>
    %c2 = arith.constant 2 : index
    %c0_12 = arith.constant 0 : index
    %19 = vector.load %arg3[%c2, %c0_12] : memref<4x128xf32, #tpu.memory_space<vmem>>, vector<1x128xf32>
    %20 = vector.broadcast %19 : vector<1x128xf32> to vector<8x128xf32>
    %21 = arith.addf %18, %20 : vector<8x128xf32>
    %cst_13 = arith.constant 0.000000e+00 : f32
    %22 = vector.broadcast %cst_13 : f32 to vector<8x128xf32>
    %23 = arith.maximumf %21, %22 : vector<8x128xf32>
    %c384 = arith.constant 384 : index
    %c0_14 = arith.constant 0 : index
    %24 = vector.load %arg2[%c384, %c0_14] : memref<512x128xbf16, #tpu.memory_space<vmem>>, vector<128x128xbf16>
    %25 = arith.truncf %23 : vector<8x128xf32> to vector<8x128xbf16>
    %cst_15 = arith.constant dense<0.000000e+00> : vector<8x128xf32>
    %26 = tpu.matmul %25, %24, %cst_15 {dimension_numbers = #tpu.dot_dimension_numbers<[1], [0], [0], [1], [0, 0, 1, 1], [], []>} : vector<8x128xbf16>, vector<128x128xbf16>, vector<8x128xf32> -> vector<8x128xf32>
    %c3 = arith.constant 3 : index
    %c0_16 = arith.constant 0 : index
    %27 = vector.load %arg3[%c3, %c0_16] : memref<4x128xf32, #tpu.memory_space<vmem>>, vector<1x128xf32>
    %28 = vector.broadcast %27 : vector<1x128xf32> to vector<8x128xf32>
    %29 = arith.addf %26, %28 : vector<8x128xf32>
    %c0_17 = arith.constant 0 : index
    %c0_18 = arith.constant 0 : index
    %30 = vector.load %arg4[%c0_17, %c0_18] : memref<8x128xf32, #tpu.memory_space<vmem>>, vector<8x128xf32>
    tpu.vector_store %arg4[%c0_17, %c0_18], %29 {strides = array<i32>} : memref<8x128xf32, #tpu.memory_space<vmem>>, vector<8x128xf32>,
    return
  }
  func.func @transform_0(%arg0: i32) -> (i32, i32) {
    %c0_i32 = arith.constant 0 : i32
    %c0_i32_0 = arith.constant 0 : i32
    return %arg0, %c0_i32 : i32, i32
  }
  func.func @transform_1(%arg0: i32) -> (i32, i32) {
    %c0_i32 = arith.constant 0 : i32
    %c0_i32_0 = arith.constant 0 : i32
    %c0_i32_1 = arith.constant 0 : i32
    return %c0_i32, %c0_i32_0 : i32, i32
  }
  func.func @transform_2(%arg0: i32) -> (i32, i32) {
    %c0_i32 = arith.constant 0 : i32
    %c0_i32_0 = arith.constant 0 : i32
    %c0_i32_1 = arith.constant 0 : i32
    return %c0_i32, %c0_i32_0 : i32, i32
  }
  func.func @transform_3(%arg0: i32) -> (i32, i32) {
    %c0_i32 = arith.constant 0 : i32
    %c0_i32_0 = arith.constant 0 : i32
    return %arg0, %c0_i32 : i32, i32
  }
}

</mosaic_0001>

<bundles_post_ra>
// kernel: tpu_custom_call.1
= control target key start
LH: loop header
LB: loop body
LE: loop exit
PB: predicated region body
PF: predicated region fallthrough
CT: control target
= control target key end

     0   :  { %8 = vsyncpa [#allocation3], 0  ;;  %s871_s0 = inlined_call_operand.hbm [shape: bf16[8,128], index: 0, kind: input, shape index: {}]   ;;  %s872_s1 = inlined_call_operand.hbm [shape: bf16[512,128], index: 1, kind: input, shape index: {}]   ;;  %s873_s2 = inlined_call_operand.hbm [shape: f32[4,128], index: 2, kind: input, shape index: {}]   ;;  %s874_s3 = inlined_call_operand.hbm [shape: f32[8,128], index: 3, kind: output, shape index: {}]  }
   0x1   :  { %9 = vsyncpa [#allocation6], 0 }
   0x2   :  { %10 = vsyncpa [#allocation4], 0  ;;  %s791_s12 = smov [#allocation5]  }
   0x3   :  { %s26_s13 = sshll.u32 %s791_s12, 4  ;;  %s27_s13 = int_to_ptr.vmem [resolvable:$true] %s26_s13 }
   0x4   :  { %s713_s14 = scalar_lea.vmem %s27_s13, 4096  ;;  %p718_p1 = scmp.lt.s32.totalorder %s27_s13, %s27_s13 }
   0x5   :  { %p714_p0 = scmp.ne.s32.totalorder %s27_s13, %s713_s14  ;;  %p719_p2 = scmp.lt.s32.totalorder %s713_s14, %s713_s14 }
   0x7   :  { %p720_p3 = por %p719_p2, %p718_p1 }
   0x9   :  { %p721_p4 = pnand %p720_p3, %p714_p0 }
   0xb   :  { %724 = shalt.err (!%p721_p4)
}
   0xc   :  { %s792_s15 = smov 64   ;;  %s793_s16 = smov 4  }
   0xd   :  { %32 = dma.hbm_to_vmem [thread:$0]  %s872_s1, 4096, %s27_s13, [#allocation6], %s792_s15, %s792_s15, %s793_s16  }
   0xe   :  { %s794_s19 = smov [#allocation2]   ;;  %s795_s21 = smov [#allocation7]  }
   0xf   :  { %s17_s20 = sshll.u32 %s794_s19, 4  ;;  %s39_s22 = sshll.u32 %s795_s21, 4  ;;  %s18_s20 = int_to_ptr.vmem [resolvable:$true] %s17_s20  ;;  %s40_s22 = int_to_ptr.vmem [resolvable:$true] %s39_s22 }
  0x10   :  { %s733_s23 = scalar_lea.vmem %s18_s20, 64  ;;  %p738_p6 = scmp.lt.s32.totalorder %s18_s20, %s18_s20 }
  0x11   :  { %p734_p5 = scmp.ne.s32.totalorder %s18_s20, %s733_s23  ;;  %p739_p7 = scmp.lt.s32.totalorder %s733_s23, %s733_s23 }
  0x13   :  { %p740_p8 = por %p739_p7, %p738_p6 }
  0x15   :  { %p741_p9 = pnand %p740_p8, %p734_p5 }
  0x17   :  { %744 = shalt.err (!%p741_p9)
}
  0x18   :  { %20 = dma.hbm_to_vmem [thread:$0]  %s871_s0, 64, %s18_s20, [#allocation3]  }
  0x19   :  { %s753_s26 = scalar_lea.vmem %s40_s22, 64  ;;  %p758_p11 = scmp.lt.s32.totalorder %s40_s22, %s40_s22 }
  0x1a   :  { %p754_p10 = scmp.ne.s32.totalorder %s40_s22, %s753_s26  ;;  %p759_p12 = scmp.lt.s32.totalorder %s753_s26, %s753_s26 }
  0x1c   :  { %p760_p13 = por %p759_p12, %p758_p11 }
  0x1e   :  { %p761_p0 = pnand %p760_p13, %p754_p10 }
  0x20   :  { %764 = shalt.err (!%p761_p0)
}
  0x21   :  { %42 = dma.hbm_to_vmem [thread:$0]  %s873_s2, 64, %s40_s22, [#allocation6]  }
  0x22   :  { %785 = dma.done.wait [#allocation3], 64  }
  0x23   :  { %786 = vsyncadd [#allocation3], 4294967232 }
  0x24   :  { %787 = dma.done.wait [#allocation6], 4160  }
  0x25   :  { %788 = vsyncadd [#allocation6], 4294963136  ;;  %v796_v0 = vmov 0.0   ;;  %vm797_vm0 = vmmov 0   ;;  %v673_v1 = vld [vmem:[#allocation5 + $0x38] sm:$0xff]   ;;  %v674_v2 = vld [vmem:[#allocation5 + $0x30] sm:$0xff]  }
  0x26   :  { %585 = vmatprep.subr.bf16.mxu0 %v796_v0  ;;  %601 = vmatprep.mubr.msk.bf16.mxu0 %vm797_vm0, %v796_v0  ;;  %v675_v3 = vld [vmem:[#allocation5 + $0x28] sm:$0xff]   ;;  %v681_v4 = vld [vmem:[#allocation5 + $0x78] sm:$0xff]   ;;  %v676_v5 = vld [vmem:[#allocation5 + $0x20] sm:$0xff]   ;;  %s798_s0 = smov [#allocation8]  }
  0x27   :  { %605 = vmatprep.subr.bf16.mxu1 %v796_v0  ;;  %621 = vmatprep.mubr.msk.bf16.mxu1 %vm797_vm0, %v796_v0  ;;  %v682_v6 = vld [vmem:[#allocation5 + $0x70] sm:$0xff]   ;;  %v677_v7 = vld [vmem:[#allocation5 + $0x18] sm:$0xff]   ;;  %v683_v8 = vld [vmem:[#allocation5 + $0x68] sm:$0xff]   ;;  %s503_s2 = sshll.u32 %s798_s0, 4  ;;  %s504_s2 = int_to_ptr.vmem [resolvable:$true] %s503_s2 }
  0x28   :  { %586 = vmatpush3.bf16.msra.mxu0 %v673_v1  ;;  %606 = vmatpush3.bf16.msra.mxu1 %v681_v4  ;;  %v678_v9 = vld [vmem:[#allocation5 + $0x10] sm:$0xff]   ;;  %v684_v10 = vld [vmem:[#allocation5 + $0x60] sm:$0xff]   ;;  %v679_v11 = vld [vmem:[#allocation5 + $0x8] sm:$0xff]   ;;  %s765_s28 = scalar_lea.vmem %s504_s2, 128  ;;  %p770_p2 = scmp.lt.s32.totalorder %s504_s2, %s504_s2 }
  0x29   :  { %587 = vmatprep.subr.bf16.mxu0 %v796_v0  ;;  %607 = vmatprep.subr.bf16.mxu1 %v796_v0  ;;  %v685_v12 = vld [vmem:[#allocation5 + $0x58] sm:$0xff]   ;;  %v680_v13 = vld [vmem:[#allocation5] sm:$0xff]   ;;  %v686_v14 = vld [vmem:[#allocation5 + $0x50] sm:$0xff]   ;;  %p766_p1 = scmp.ne.s32.totalorder %s504_s2, %s765_s28  ;;  %p771_p3 = scmp.lt.s32.totalorder %s765_s28, %s765_s28 }
  0x2a   :  { %v53_v15 = vld [vmem:[#allocation2] sm:$0xf]  ;;  %v687_v16 = vld [vmem:[#allocation5 + $0x48] sm:$0xff]   ;;  %v688_v17 = vld [vmem:[#allocation5 + $0x40] sm:$0xff]  }
  0x2b   :  { %v689_v18 = vld [vmem:[#allocation5 + $0xb8] sm:$0xff]   ;;  %v690_v19 = vld [vmem:[#allocation5 + $0xb0] sm:$0xff]   ;;  %v691_v20 = vld [vmem:[#allocation5 + $0xa8] sm:$0xff]   ;;  %p772_p4 = por %p771_p3, %p770_p2 }
  0x2c   :  { %588 = vmatpush3.bf16.msra.mxu0 %v674_v2  ;;  %608 = vmatpush3.bf16.msra.mxu1 %v682_v6  ;;  %v692_v21 = vld [vmem:[#allocation5 + $0xa0] sm:$0xff]   ;;  %v693_v22 = vld [vmem:[#allocation5 + $0x98] sm:$0xff]   ;;  %v694_v23 = vld [vmem:[#allocation5 + $0x90] sm:$0xff]  }
  0x2d   :  { %589 = vmatprep.subr.bf16.mxu0 %v796_v0  ;;  %609 = vmatprep.subr.bf16.mxu1 %v796_v0  ;;  %v513_v24 = vld [vmem:[#allocation7] ss:$0 sm:$0xff]  ;;  %v695_v32 = vld [vmem:[#allocation5 + $0x88] sm:$0xff]   ;;  %v697_v34 = vld [vmem:[#allocation5 + $0xf8] sm:$0xff]   ;;  %p773_p5 = pnand %p772_p4, %p766_p1 }
  0x2e   :  { %v696_v33 = vld [vmem:[#allocation5 + $0x80] sm:$0xff]   ;;  %v698_v35 = vld [vmem:[#allocation5 + $0xf0] sm:$0xff]   ;;  %v699_v36 = vld [vmem:[#allocation5 + $0xe8] sm:$0xff]  }
  0x2f   :  { %v700_v37 = vld [vmem:[#allocation5 + $0xe0] sm:$0xff]   ;;  %v701_v38 = vld [vmem:[#allocation5 + $0xd8] sm:$0xff]   ;;  %v702_v39 = vld [vmem:[#allocation5 + $0xd0] sm:$0xff]  }
  0x30   :  { %590 = vmatpush3.bf16.msra.mxu0 %v675_v3  ;;  %610 = vmatpush3.bf16.msra.mxu1 %v683_v8  ;;  %v522_v40 = vld [vmem:[#allocation7 + $0x1] ss:$0 sm:$0xff]  ;;  %v703_v48 = vld [vmem:[#allocation5 + $0xc8] sm:$0xff]   ;;  %v531_v50 = vld [vmem:[#allocation7 + $0x2] ss:$0 sm:$0xff] }
  0x31   :  { %591 = vmatprep.subr.bf16.mxu0 %v796_v0  ;;  %611 = vmatprep.subr.bf16.mxu1 %v796_v0  ;;  %v704_v49 = vld [vmem:[#allocation5 + $0xc0] sm:$0xff]  }
  0x32   :  { %v540_v58 = vld [vmem:[#allocation7 + $0x3] ss:$0 sm:$0xff] }
  0x34   :  { %592 = vmatpush3.bf16.msra.mxu0 %v676_v5  ;;  %612 = vmatpush3.bf16.msra.mxu1 %v684_v10 }
  0x35   :  { %593 = vmatprep.subr.bf16.mxu0 %v796_v0  ;;  %613 = vmatprep.subr.bf16.mxu1 %v796_v0 }
  0x38   :  { %594 = vmatpush3.bf16.msra.mxu0 %v677_v7  ;;  %614 = vmatpush3.bf16.msra.mxu1 %v685_v12 }
  0x39   :  { %595 = vmatprep.subr.bf16.mxu0 %v796_v0  ;;  %615 = vmatprep.subr.bf16.mxu1 %v796_v0 }
  0x3c   :  { %596 = vmatpush3.bf16.msra.mxu0 %v678_v9  ;;  %616 = vmatpush3.bf16.msra.mxu1 %v686_v14 }
  0x3d   :  { %597 = vmatprep.subr.bf16.mxu0 %v796_v0  ;;  %617 = vmatprep.subr.bf16.mxu1 %v796_v0 }
  0x40   :  { %598 = vmatpush3.bf16.msra.mxu0 %v679_v11  ;;  %618 = vmatpush3.bf16.msra.mxu1 %v687_v16 }
  0x41   :  { %599 = vmatprep.subr.bf16.mxu0 %v796_v0  ;;  %619 = vmatprep.subr.bf16.mxu1 %v796_v0 }
  0x44   :  { %600 = vmatpush3.bf16.msra.mxu0 %v680_v13  ;;  %620 = vmatpush3.bf16.msra.mxu1 %v688_v17 }
  0x45   :  { %625 = vmatprep.subr.bf16.mxu0 %v796_v0  ;;  %645 = vmatprep.subr.bf16.mxu1 %v796_v0 }
  0x47   :  { %602 = vmatmul.mubr.bf16.vlgmr.msra.gmra.mxu0 %v53_v15 }
  0x48   :  { %641 = vmatprep.mubr.msk.bf16.mxu0 %vm797_vm0, %v796_v0  ;;  %626 = vmatpush3.bf16.msra.mxu0 %v689_v18 }
  0x49   :  { %627 = vmatprep.subr.bf16.mxu0 %v796_v0 }
  0x4c   :  { %628 = vmatpush3.bf16.msra.mxu0 %v690_v19 }
  0x4d   :  { %629 = vmatprep.subr.bf16.mxu0 %v796_v0 }
  0x50   :  { %630 = vmatpush3.bf16.msra.mxu0 %v691_v20 }
  0x51   :  { %631 = vmatprep.subr.bf16.mxu0 %v796_v0 }
  0x54   :  { %632 = vmatpush3.bf16.msra.mxu0 %v692_v21 }
  0x55   :  { %633 = vmatprep.subr.bf16.mxu0 %v796_v0 }
  0x58   :  { %634 = vmatpush3.bf16.msra.mxu0 %v693_v22 }
  0x59   :  { %635 = vmatprep.subr.bf16.mxu0 %v796_v0 }
  0x5c   :  { %636 = vmatpush3.bf16.msra.mxu0 %v694_v23 }
  0x5d   :  { %637 = vmatprep.subr.bf16.mxu0 %v796_v0 }
  0x60   :  { %638 = vmatpush3.bf16.msra.mxu0 %v695_v32 }
  0x61   :  { %639 = vmatprep.subr.bf16.mxu0 %v796_v0 }
  0x64   :  { %640 = vmatpush3.bf16.msra.mxu0 %v696_v33 }
 0x107   :  { %v157_v25 = vpop.f32.mrf.mxu0 }
 0x108   :  { %v158_v26 = vadd.f32 %v513_v24, %v157_v25 }
 0x109   :  { %v603_v27 = vpop.f32.mrf.mxu0 }
 0x10a   :  { %v163_v28 = vmax.f32 %v158_v26, 0.0 }
 0x10b   :  { %v160_v29 = vpop.f32.mrf.mxu0 }
 0x10c   :  { %v180_v30 = vpack.c.bf16 %v163_v28, %v163_v28 }
 0x10d   :  { %v604_v31 = vpop.f32.mrf.mxu0 }
 0x10e   :  { %622 = vmatmul.mubr.bf16.vlgmr.msra.gmra.mxu1 %v180_v30 }
 0x10f   :  { %661 = vmatprep.mubr.msk.bf16.mxu1 %vm797_vm0, %v796_v0  ;;  %646 = vmatpush3.bf16.msra.mxu1 %v697_v34 }
 0x110   :  { %647 = vmatprep.subr.bf16.mxu1 %v796_v0 }
 0x113   :  { %648 = vmatpush3.bf16.msra.mxu1 %v698_v35 }
 0x114   :  { %649 = vmatprep.subr.bf16.mxu1 %v796_v0 }
 0x117   :  { %650 = vmatpush3.bf16.msra.mxu1 %v699_v36 }
 0x118   :  { %651 = vmatprep.subr.bf16.mxu1 %v796_v0 }
 0x11b   :  { %652 = vmatpush3.bf16.msra.mxu1 %v700_v37 }
 0x11c   :  { %653 = vmatprep.subr.bf16.mxu1 %v796_v0 }
 0x11f   :  { %654 = vmatpush3.bf16.msra.mxu1 %v701_v38 }
 0x120   :  { %655 = vmatprep.subr.bf16.mxu1 %v796_v0 }
 0x123   :  { %656 = vmatpush3.bf16.msra.mxu1 %v702_v39 }
 0x124   :  { %657 = vmatprep.subr.bf16.mxu1 %v796_v0 }
 0x127   :  { %658 = vmatpush3.bf16.msra.mxu1 %v703_v48 }
 0x128   :  { %659 = vmatprep.subr.bf16.mxu1 %v796_v0 }
 0x12b   :  { %660 = vmatpush3.bf16.msra.mxu1 %v704_v49 }
 0x1ce   :  { %v268_v41 = vpop.f32.mrf.mxu1 }
 0x1cf   :  { %v269_v42 = vadd.f32 %v522_v40, %v268_v41 }
 0x1d0   :  { %v623_v43 = vpop.f32.mrf.mxu1 }
 0x1d1   :  { %v274_v44 = vmax.f32 %v269_v42, 0.0 }
 0x1d2   :  { %v271_v45 = vpop.f32.mrf.mxu1 }
 0x1d3   :  { %v291_v46 = vpack.c.bf16 %v274_v44, %v274_v44 }
 0x1d4   :  { %v624_v47 = vpop.f32.mrf.mxu1 }
 0x1d5   :  { %642 = vmatmul.mubr.bf16.vlgmr.msra.gmra.mxu0 %v291_v46 }
 0x295   :  { %v379_v51 = vpop.f32.mrf.mxu0 }
 0x296   :  { %v380_v52 = vadd.f32 %v531_v50, %v379_v51 }
 0x297   :  { %v643_v53 = vpop.f32.mrf.mxu0 }
 0x298   :  { %v385_v54 = vmax.f32 %v380_v52, 0.0 }
 0x299   :  { %v382_v55 = vpop.f32.mrf.mxu0 }
 0x29a   :  { %v402_v56 = vpack.c.bf16 %v385_v54, %v385_v54 }
 0x29b   :  { %v644_v57 = vpop.f32.mrf.mxu0 }
 0x29c   :  { %662 = vmatmul.mubr.bf16.vlgmr.msra.gmra.mxu1 %v402_v56 }
 0x35c   :  { %v490_v59 = vpop.f32.mrf.mxu1 }
 0x35d   :  { %v491_v60 = vadd.f32 %v540_v58, %v490_v59 }
 0x35e   :  { %v663_v61 = vpop.f32.mrf.mxu1 }
 0x35f   :  { %496 = vst [vmem:[#allocation8] sm:$0xff] %v491_v60 }
 0x360   :  { %v493_v62 = vpop.f32.mrf.mxu1 }
 0x361   :  { %776 = shalt.err (!%p773_p5)
}
 0x362   :  { %506 = dma.vmem_to_hbm [thread:$0]  %s504_s2, 128, %s874_s3, [#allocation4]   ;;  %v664_v63 = vpop.f32.mrf.mxu1 }
 0x363   :  { %789 = dma.done.wait [#allocation4], 128  }
 0x364   :  { %790 = vsyncadd [#allocation4], 4294967168 }
 0x365   :  { %510 = vsyncpa [#allocation3], 1 }
 0x366   :  { %511 = vsyncpa [#allocation6], 1 }
 0x367   :  { %512 = vsyncpa [#allocation4], 1 }

</bundles_post_ra>
